<compile_context>
chip_gen: v7x
topology: tpu7x:2x2x1
jax: 0.10.0
libtpu: 0.0.40
codegen_flags: <defaults>
</compile_context>

<pallas_src>
import functools

import jax
import jax.numpy as jnp
from jax.experimental import pallas as pl
from jax.experimental.pallas import tpu as pltpu

_HIDDEN = 128


def _round_up(x, m):
    return ((x + m - 1) // m) * m


def _cdiv(a, b):
    return -(-a // b)


def _head(h_pre, p_ref, o_ref):
    """bias + ReLU + second layer + sigmoid on a (tile_b, H) pre-activation."""
    b1 = p_ref[0:1, :]          # (1, H)
    w2 = p_ref[1:2, :]          # (1, H)  second-layer weights as a row
    b2 = p_ref[2:3, 0:1]        # (1, 1)
    h = jnp.maximum(h_pre + b1, 0.0)                         # VPU, f32
    logit = jnp.sum(h * w2, axis=-1, keepdims=True) + b2      # VPU mul + XLU reduce
    # Sigmoid: exp + approximate reciprocal land on the otherwise-idle EUP slot.
    o_ref[...] = pl.reciprocal(1.0 + jnp.exp(-logit), approx=True)


def _disc_kernel_single(x_ref, w1_ref, p_ref, o_ref):
    # x_ref: (tile_b, D) f32 ; w1_ref: (D, H) f32 (resident) ; p_ref: (3, H) f32.
    h = jnp.dot(x_ref[...], w1_ref[...], preferred_element_type=jnp.float32)
    _head(h, p_ref, o_ref)


def _disc_kernel_ksplit(x_ref, w1_ref, p_ref, o_ref, acc_ref):
    # K reduction axis (last grid axis, "arbitrary"); acc_ref: (tile_b, H) f32.
    k = pl.program_id(1)

    @pl.when(k == 0)
    def _():
        acc_ref[...] = jnp.zeros_like(acc_ref)

    acc_ref[...] += jnp.dot(x_ref[...], w1_ref[...],
                            preferred_element_type=jnp.float32)

    @pl.when(k == pl.num_programs(1) - 1)
    def _():
        _head(acc_ref[...], p_ref, o_ref)


def _choose_tiles(B, D, H, k_split_min_d):
    """Pick (tile_b, tile_k, vmem_need_bytes, vmem_capacity_bytes)."""
    itemsize = 4  # f32 throughout
    try:
        vmem_cap = int(pltpu.get_tpu_info().vmem_capacity_bytes)
    except Exception:
        vmem_cap = 64 << 20  # v7x per-TC floor; conservative everywhere
    budget = int(vmem_cap * 0.6)

    # K tiling: full-extent unless D is large and cleanly divisible by a
    # 128/256-aligned slice (keeps MXU K depth aligned, VMEM decoupled from D).
    tile_k = D
    if D > k_split_min_d:
        for cand in (2048, 1024, 512, 256, 128):
            if cand < D and D % cand == 0:
                tile_k = cand
                break

    # Batch tile: target ~4 MiB of x per step, multiple of 16 rows, at least 2
    # grid steps along batch when B allows (v7x megacore), capped by B and VMEM.
    target_x_bytes = 4 << 20
    tile_b = max(16, target_x_bytes // (tile_k * itemsize))
    tile_b = _round_up(tile_b, 16)
    half_b = _round_up(_cdiv(B, 2), 16)
    tile_b = min(tile_b, max(half_b, 16))
    tile_b = min(tile_b, _round_up(B, 16))
    tile_b = max(tile_b, 16)

    def vmem_need(tb):
        need = 2 * tb * tile_k * itemsize       # x, double-buffered
        need += 2 * tile_k * H * itemsize       # w1 block, double-buffered
        need += 2 * tb * 1 * itemsize           # output, double-buffered
        need += 2 * 8 * 128 * itemsize          # fused params (padded tile)
        if tile_k != D:
            need += tb * H * itemsize           # f32 accumulator scratch
        return need

    while tile_b > 16 and vmem_need(tile_b) > budget:
        tile_b = max(16, _round_up(tile_b // 2, 16))

    return tile_b, tile_k, vmem_need(tile_b), vmem_cap


@functools.partial(jax.jit, static_argnames=("k_split_min_d",))
def discriminator_forward(x, w1, b1, w2, b2, *, k_split_min_d=2048):
    """x: (B, D) f32; w1: (D, 128); b1: (1, 128) or (128,); w2: (128, 1); b2: (1,1)/()."""
    B, D = x.shape
    H = w1.shape[1]

    tile_b, tile_k, need_bytes, vmem_cap = _choose_tiles(B, D, H, k_split_min_d)
    grid_b = _cdiv(B, tile_b)
    vmem_limit = int(min(max(2 * need_bytes, 1 << 20) + (1 << 20),
                         int(vmem_cap * 0.9)))

    # Fuse the small second-layer parameters into one resident f32 block:
    # row 0 = b1, row 1 = w2 (as a row), row 2 = [b2, 0, ...].
    params = jnp.zeros((3, H), jnp.float32)
    params = params.at[0, :].set(jnp.reshape(b1, (H,)).astype(jnp.float32))
    params = params.at[1, :].set(jnp.reshape(w2, (H,)).astype(jnp.float32))
    params = params.at[2, 0].set(jnp.reshape(b2, ()).astype(jnp.float32))

    w1f = w1.astype(jnp.float32)
    out_shape = jax.ShapeDtypeStruct((B, 1), jnp.float32)

    if tile_k == D:
        out = pl.pallas_call(
            _disc_kernel_single,
            out_shape=out_shape,
            grid=(grid_b,),
            in_specs=[
                pl.BlockSpec((tile_b, D), lambda i: (i, 0)),   # x: tiled over batch
                pl.BlockSpec((D, H), lambda i: (0, 0)),        # w1: resident
                pl.BlockSpec((3, H), lambda i: (0, 0)),        # fused b1/w2/b2: resident
            ],
            out_specs=pl.BlockSpec((tile_b, 1), lambda i: (i, 0)),
            compiler_params=pltpu.CompilerParams(
                dimension_semantics=("parallel",),
                vmem_limit_bytes=vmem_limit),
        )(x, w1f, params)
    else:
        grid_k = D // tile_k
        out = pl.pallas_call(
            _disc_kernel_ksplit,
            out_shape=out_shape,
            grid=(grid_b, grid_k),
            in_specs=[
                pl.BlockSpec((tile_b, tile_k), lambda i, k: (i, k)),
                pl.BlockSpec((tile_k, H), lambda i, k: (k, 0)),
                pl.BlockSpec((3, H), lambda i, k: (0, 0)),
            ],
            out_specs=pl.BlockSpec((tile_b, 1), lambda i, k: (i, 0)),
            scratch_shapes=[pltpu.VMEM((tile_b, H), jnp.float32)],
            compiler_params=pltpu.CompilerParams(
                dimension_semantics=("parallel", "arbitrary"),
                vmem_limit_bytes=vmem_limit),
        )(x, w1f, params)

    return out  # padded tail rows (if any) never exist: out_shape is exactly (B, 1)


def init_params(key, input_dim, hidden=_HIDDEN):
    """Deterministic init mimicking nn.Linear default (uniform +/- 1/sqrt(fan_in))."""
    k1, k2, k3, k4 = jax.random.split(key, 4)
    bound1 = 1.0 / jnp.sqrt(jnp.float32(input_dim))
    bound2 = 1.0 / jnp.sqrt(jnp.float32(hidden))
    w1 = jax.random.uniform(k1, (input_dim, hidden), jnp.float32, -bound1, bound1)
    b1 = jax.random.uniform(k2, (1, hidden), jnp.float32, -bound1, bound1)
    w2 = jax.random.uniform(k3, (hidden, 1), jnp.float32, -bound2, bound2)
    b2 = jax.random.uniform(k4, (1, 1), jnp.float32, -bound2, bound2)
    return w1, b1, w2, b2


def _ref(x, w1, b1, w2, b2):
    return jax.nn.sigmoid(jnp.maximum(x @ w1 + b1, 0.0) @ w2 + b2)


if __name__ == "__main__":
    key = jax.random.PRNGKey(0)
    kx, kp, kx2, kp3, kx3 = jax.random.split(key, 5)

    # Small shapes consistent with the module: batch=8, input_dim=32.
    B, D = 8, 32
    x = jax.random.normal(kx, (B, D), jnp.float32)
    w1, b1, w2, b2 = init_params(kp, D)
    out = jax.block_until_ready(discriminator_forward(x, w1, b1, w2, b2))
    assert out.shape == (B, 1)
    ref = _ref(x, w1, b1, w2, b2)
    assert jnp.allclose(out, ref, atol=1e-2, rtol=1e-2), (
        float(jnp.max(jnp.abs(out - ref))))

    # Ragged batch: exercises the masked batch-tail boundary block.
    B2 = 50
    x2 = jax.random.normal(kx2, (B2, D), jnp.float32)
    out2 = jax.block_until_ready(discriminator_forward(x2, w1, b1, w2, b2))
    ref2 = _ref(x2, w1, b1, w2, b2)
    assert out2.shape == (B2, 1)
    assert jnp.allclose(out2, ref2, atol=1e-2, rtol=1e-2), (
        float(jnp.max(jnp.abs(out2 - ref2))))

    # K-split accumulator path (forced with a low split threshold).
    B3, D3 = 40, 512
    x3 = jax.random.normal(kx3, (B3, D3), jnp.float32)
    w1c, b1c, w2c, b2c = init_params(kp3, D3)
    out3 = jax.block_until_ready(
        discriminator_forward(x3, w1c, b1c, w2c, b2c, k_split_min_d=256))
    ref3 = _ref(x3, w1c, b1c, w2c, b2c)
    assert out3.shape == (B3, 1)
    assert jnp.allclose(out3, ref3, atol=1e-2, rtol=1e-2), (
        float(jnp.max(jnp.abs(out3 - ref3))))

    print("KERNEL_OK")
</pallas_src>

<mosaic_0001>
module attributes {stable_mosaic.version = 11 : i64} {
  func.func @_disc_kernel_single(%arg0: i32, %arg1: memref<16x32xf32, #tpu.memory_space<vmem>>, %arg2: memref<32x128xf32, #tpu.memory_space<vmem>>, %arg3: memref<3x128xf32, #tpu.memory_space<vmem>>, %arg4: memref<16x1xf32, #tpu.memory_space<vmem>>) attributes {dimension_semantics = [#tpu.dimension_semantics<parallel>], iteration_bounds = array<i64: 1>, scalar_prefetch = 0 : i64, scratch_operands = 0 : i64, tpu.core_type = #tpu.core_type<tc>, window_params = [{transform_indices = @transform_0, window_bounds = array<i64: 16, 32>}, {pipeline_mode = #tpu.pipeline_mode<synchronous>, transform_indices = @transform_1, window_bounds = array<i64: 32, 128>}, {pipeline_mode = #tpu.pipeline_mode<synchronous>, transform_indices = @transform_2, window_bounds = array<i64: 3, 128>}, {transform_indices = @transform_3, window_bounds = array<i64: 16, 1>}]} {
    %c0 = arith.constant 0 : index
    %c0_0 = arith.constant 0 : index
    %0 = vector.load %arg1[%c0, %c0_0] : memref<16x32xf32, #tpu.memory_space<vmem>>, vector<16x32xf32>
    %c0_1 = arith.constant 0 : index
    %c0_2 = arith.constant 0 : index
    %1 = vector.load %arg2[%c0_1, %c0_2] : memref<32x128xf32, #tpu.memory_space<vmem>>, vector<32x128xf32>
    %cst = arith.constant dense<0.000000e+00> : vector<16x128xf32>
    %2 = tpu.matmul %0, %1, %cst {dimension_numbers = #tpu.dot_dimension_numbers<[1], [0], [0], [1], [0, 0, 1, 1], [], []>} : vector<16x32xf32>, vector<32x128xf32>, vector<16x128xf32> -> vector<16x128xf32>
    %c0_3 = arith.constant 0 : index
    %c0_4 = arith.constant 0 : index
    %3 = vector.load %arg3[%c0_3, %c0_4] : memref<3x128xf32, #tpu.memory_space<vmem>>, vector<1x128xf32>
    %c1 = arith.constant 1 : index
    %c0_5 = arith.constant 0 : index
    %4 = vector.load %arg3[%c1, %c0_5] : memref<3x128xf32, #tpu.memory_space<vmem>>, vector<1x128xf32>
    %c2 = arith.constant 2 : index
    %c0_6 = arith.constant 0 : index
    %5 = vector.load %arg3[%c2, %c0_6] : memref<3x128xf32, #tpu.memory_space<vmem>>, vector<1x1xf32>
    %6 = vector.broadcast %3 : vector<1x128xf32> to vector<16x128xf32>
    %7 = arith.addf %2, %6 : vector<16x128xf32>
    %cst_7 = arith.constant 0.000000e+00 : f32
    %8 = vector.broadcast %cst_7 : f32 to vector<16x128xf32>
    %9 = arith.maximumf %7, %8 : vector<16x128xf32>
    %10 = vector.broadcast %4 : vector<1x128xf32> to vector<16x128xf32>
    %11 = arith.mulf %9, %10 : vector<16x128xf32>
    %cst_8 = arith.constant dense<0.000000e+00> : vector<16xf32>
    %12 = vector.multi_reduction <add>, %11, %cst_8 [1] : vector<16x128xf32> to vector<16xf32>
    %13 = vector.shape_cast %12 : vector<16xf32> to vector<16x1xf32>
    %14 = vector.broadcast %5 : vector<1x1xf32> to vector<16x1xf32>
    %15 = arith.addf %13, %14 : vector<16x1xf32>
    %cst_9 = arith.constant 0.000000e+00 : f32
    %16 = vector.broadcast %cst_9 : f32 to vector<16x1xf32>
    %17 = arith.subf %16, %15 : vector<16x1xf32>
    %18 = math.exp %17 : vector<16x1xf32>
    %cst_10 = arith.constant 1.000000e+00 : f32
    %19 = vector.broadcast %cst_10 : f32 to vector<16x1xf32>
    %20 = arith.addf %19, %18 : vector<16x1xf32>
    %21 = tpu.reciprocal %20 {approx = true} : vector<16x1xf32> -> vector<16x1xf32>
    %c0_11 = arith.constant 0 : index
    %c0_12 = arith.constant 0 : index
    %22 = vector.load %arg4[%c0_11, %c0_12] : memref<16x1xf32, #tpu.memory_space<vmem>>, vector<16x1xf32>
    tpu.vector_store %arg4[%c0_11, %c0_12], %21 {strides = array<i32>} : memref<16x1xf32, #tpu.memory_space<vmem>>, vector<16x1xf32>,
    return
  }
  func.func @transform_0(%arg0: i32) -> (i32, i32) {
    %c0_i32 = arith.constant 0 : i32
    %c0_i32_0 = arith.constant 0 : i32
    return %arg0, %c0_i32 : i32, i32
  }
  func.func @transform_1(%arg0: i32) -> (i32, i32) {
    %c0_i32 = arith.constant 0 : i32
    %c0_i32_0 = arith.constant 0 : i32
    %c0_i32_1 = arith.constant 0 : i32
    return %c0_i32, %c0_i32_0 : i32, i32
  }
  func.func @transform_2(%arg0: i32) -> (i32, i32) {
    %c0_i32 = arith.constant 0 : i32
    %c0_i32_0 = arith.constant 0 : i32
    %c0_i32_1 = arith.constant 0 : i32
    return %c0_i32, %c0_i32_0 : i32, i32
  }
  func.func @transform_3(%arg0: i32) -> (i32, i32) {
    %c0_i32 = arith.constant 0 : i32
    %c0_i32_0 = arith.constant 0 : i32
    return %arg0, %c0_i32 : i32, i32
  }
}

</mosaic_0001>

<bundles_post_ra>
// kernel: discriminator_forward.1
= control target key start
LH: loop header
LB: loop body
LE: loop exit
PB: predicated region body
PF: predicated region fallthrough
CT: control target
= control target key end

     0   :  { %8 = vsyncpa [#allocation3], 0  ;;  %s260_s12 = smov [#allocation2]   ;;  %s313_s0 = inlined_call_operand.vmem [shape: f32[8,32], index: 0, kind: input, shape index: {}]   ;;  %s314_s1 = inlined_call_operand.hbm [shape: f32[32,128], index: 1, kind: input, shape index: {}]   ;;  %s315_s2 = inlined_call_operand.vmem [shape: f32[3,128], index: 2, kind: input, shape index: {}]   ;;  %s316_s3 = inlined_call_operand.vmem [shape: f32[8,1], index: 3, kind: output, shape index: {}]  }
   0x1   :  { %s16_s13 = sshll.u32 %s260_s12, 4  ;;  %s236_s16 = scalar_lea.hbm %s314_s1, 512  ;;  %s17_s13 = int_to_ptr.vmem [resolvable:$true] %s16_s13 }
   0x2   :  { %p237_p0 = scmp.ne.s32.totalorder %s314_s1, %s236_s16  ;;  %p240_p1 = scmp.lt.u32.totalorder %s236_s16, %s314_s1 }
   0x4   :  { %p242_p2 = pnand %p240_p1, %p237_p0 }
   0x6   :  { %245 = shalt.err (!%p242_p2)
}
   0x7   :  { %s246_s21 = scalar_lea.vmem %s17_s13, 512  ;;  %p251_p4 = scmp.lt.s32.totalorder %s17_s13, %s17_s13 }
   0x8   :  { %p247_p3 = scmp.ne.s32.totalorder %s17_s13, %s246_s21  ;;  %p252_p5 = scmp.lt.s32.totalorder %s246_s21, %s246_s21 }
   0xa   :  { %p253_p6 = por %p252_p5, %p251_p4 }
   0xc   :  { %p254_p7 = pnand %p253_p6, %p247_p3 }
   0xe   :  { %257 = shalt.err (!%p254_p7)
}
   0xf   :  { %s261_s22 = smov 128   ;;  %s262_s23 = smov 8  }
  0x10   :  { %22 = dma.hbm_to_vmem [thread:$0]  %s314_s1, 512, %s17_s13, [#allocation3], %s261_s22, %s261_s22, %s262_s23  }
  0x11   :  { %258 = dma.done.wait [#allocation3], 512  }
  0x12   :  { %259 = vsyncadd [#allocation3], 4294966784  ;;  %vm41_vm0 = vcmask 261120   ;;  %v30_v0 = vld [vmem:[#allocation2] sm:$0xff]  ;;  %v31_v1 = vld [vmem:[#allocation2 + $0x8] sm:$0xff]  ;;  %vm151_vm1 = vcmask 7168  }
  0x13   :  { %v32_v2 = vld [vmem:[#allocation2 + $0x10] sm:$0xff]  ;;  %v217_v3 = vpack.c.bf16 %v31_v1, %v30_v0  ;;  %v33_v4 = vld [vmem:[#allocation2 + $0x18] sm:$0xff]  ;;  %v28_v5 = vld [vmem:[%s313_s0] sm:$0xff] }
  0x14   :  { %v221_v6 = vpack.c.bf16 %v33_v4, %v32_v2  ;;  %214 = vmatprep.mubr.msk.f32.mxu0 %vm41_vm0, %v28_v5  ;;  %v29_v7 = vld [vmem:[%s313_s0 + $0x8] sm:$0xff]  ;;  %v195_v8 = vld [vmem:[%s315_s2] ss:$0 sm:$0xff]  ;;  %v198_v13 = vld [vmem:[%s315_s2 + $0x1] ss:$0 sm:$0xff] }
  0x15   :  { %218 = vmatprep.subr.bf16.mxu0 %v217_v3  ;;  %v199_v18 = vld [vmem:[%s315_s2 + $0x2] ss:$0 sm:$0xff] }
  0x16   :  { %220 = vmatpush3.bf16.msra.mxu0 %v217_v3 }
  0x17   :  { %222 = vmatprep.subr.bf16.mxu0 %v221_v6 }
  0x1a   :  { %224 = vmatpush3.bf16.msra.mxu0 %v221_v6 }
  0x1d   :  { %215 = vmatmul.mubr.msk.f32.vlgmr.msra.gmra.mrb[0].mxu0 %vm41_vm0, %v29_v7 }
  0xf0   :  { %v216_v9 = vpop.f32.mrb[0].mxu0 }
  0xf1   :  { %v114_v10 = vpop.f32.mrb[1].mxu0  ;;  %v120_v11 = vadd.f32 %v216_v9, %v195_v8 }
  0xf2   :  { %v115_v12 = vadd.f32 %v195_v8, %v114_v10 }
  0xf3   :  { %v124_v15 = vmax.f32 %v120_v11, 0.0 }
  0xf4   :  { %v123_v14 = vmax.f32 %v115_v12, 0.0 }
  0xf5   :  { %v130_v17 = vmul.f32 %v198_v13, %v124_v15 }
  0xf6   :  { %v129_v16 = vmul.f32 %v198_v13, %v123_v14 }
  0xf8   :  { %131 = vadd.xlane.f32.xlu0 %v129_v16 }
  0xfc   :  { %133 = vadd.xlane.f32.xlu0 %v130_v17 }
 0x185   :  { %v132_v19 = vpop.xlane.xlu0 %131 }
 0x186   :  { %v139_v20 = vadd.f32 %v199_v18, %v132_v19 }
 0x188   :  { %v141_v21 = vsub.f32 0.0, %v139_v20 }
 0x189   :  { %v134_v22 = vpop.xlane.xlu0 %133 }
 0x18a   :  { %v143_v23 = vmul.f32 1.442695, %v141_v21  ;;  %v140_v24 = vadd.f32 %v199_v18, %v134_v22 }
 0x18c   :  { %228 = vpow2.f32 %v143_v23  ;;  %v142_v25 = vsub.f32 0.0, %v140_v24 }
 0x18e   :  { %v145_v26 = vmul.f32 1.442695, %v142_v25 }
 0x190   :  { %230 = vpow2.f32 %v145_v26 }
 0x196   :  { %v229_v27 = vpop.eup %228 }
 0x197   :  { %v147_v28 = vadd.f32 1.0, %v229_v27 }
 0x199   :  { %232 = vrcp.f32 %v147_v28 }
 0x19a   :  { %v231_v29 = vpop.eup %230 }
 0x19b   :  { %v148_v30 = vadd.f32 1.0, %v231_v29 }
 0x19d   :  { %234 = vrcp.f32 %v148_v30 }
 0x1a3   :  { %v233_v31 = vpop.eup %232 }
 0x1a4   :  { %152 = vst.msk [vmem:[#allocation4] sm:$0xff] %vm151_vm1, %v233_v31 }
 0x1a7   :  { %v235_v32 = vpop.eup %234 }
 0x1ab   :  { %v183_v33 = vld [vmem:[#allocation4] sm:$0xff] }
 0x1ac   :  { %184 = vst [vmem:[%s316_s3] sm:$0xff] %v183_v33 }
 0x1ad   :  { %190 = vsyncpa [#allocation3], 1 }

</bundles_post_ra>
